<compile_context>
chip_gen: v7x
topology: tpu7x:2x2x1
jax: 0.10.0
libtpu: 0.0.40
codegen_flags: <defaults>
</compile_context>

<pallas_src>
import math
from functools import partial

import numpy as np
import jax
import jax.numpy as jnp
from jax import lax
from jax.experimental import pallas as pl
from jax.experimental.pallas import tpu as pltpu

# ---------------- config (small, consistent with the module) ----------------
HIDDEN = 32
NUM_HEADS = 4
NUM_KV_HEADS = 2
HEAD_DIM = HIDDEN // NUM_HEADS            # 8
N_REP = NUM_HEADS // NUM_KV_HEADS         # 2
LOW_RANK = 4
ROPE_THETA = 10000.0
TOP_K_ROPE_DIM = 2                        # partial_rope_version = 1
BATCH = 2
SEQ = 8
DTYPE = jnp.float32

Q_DIM = NUM_HEADS * HEAD_DIM              # 32
KV_DIM = NUM_KV_HEADS * HEAD_DIM          # 16
C_DIM = LOW_RANK * NUM_KV_HEADS           # 8

# packed-weight slab column layout: [ w_o (padded) | w_in | w_up (row padded) ]
OUT_PAD = 128                             # lane-dense output width (>= HIDDEN)
W_IN_COLS = 128                           # lane-dense fused-input-proj width
WO_OFF, WIN_OFF, WUP_OFF = 0, OUT_PAD, OUT_PAD + W_IN_COLS
W_PACK_COLS = WUP_OFF + 2 * KV_DIM        # 288


# ---------------- nope mask (IndexForNope, version 1) ----------------
def build_nope_mask():
    half = HEAD_DIM // 2
    per_half = np.ones(half, dtype=bool)
    per_half[:TOP_K_ROPE_DIM] = False
    per_head = np.concatenate([per_half, per_half])           # (head_dim,)
    return np.tile(per_head, NUM_KV_HEADS)                    # (kv_heads*head_dim,)


NOPE_MASK = build_nope_mask()
ROPE_IDX = np.where(~NOPE_MASK)[0]        # positions that carry RoPE
NOPE_IDX = np.where(NOPE_MASK)[0]         # positions filled by W_up_k
N_ROPE = int(ROPE_IDX.shape[0])
N_NOPE = int(NOPE_IDX.shape[0])


# ---------------- RoPE tables ----------------
def rope_cos_sin(seq_len):
    inv_freq = 1.0 / (ROPE_THETA ** (np.arange(0, HEAD_DIM, 2, dtype=np.float32) / HEAD_DIM))
    pos = np.arange(seq_len, dtype=np.float32)
    freqs = np.outer(pos, inv_freq)                           # (S, D/2)
    emb = np.concatenate([freqs, freqs], axis=-1)             # (S, D)
    return np.cos(emb).astype(np.float32), np.sin(emb).astype(np.float32)


# ---------------- parameters (deterministic, synthetic; PyTorch nn.Linear layout) ----------------
def init_params(key):
    ks = jax.random.split(key, 6)
    scale = 0.05

    def lin(k, out_dim, in_dim):
        return scale * jax.random.normal(k, (out_dim, in_dim), DTYPE)

    return {
        "q_proj":   lin(ks[0], Q_DIM, HIDDEN),
        "W_k_r":    lin(ks[1], N_ROPE, HIDDEN),
        "W_down_k": lin(ks[2], C_DIM, HIDDEN),
        "W_up_k":   lin(ks[3], KV_DIM - N_ROPE, C_DIM),
        "W_up_v":   lin(ks[4], KV_DIM, C_DIM),
        "o_proj":   lin(ks[5], HIDDEN, Q_DIM),
    }


# ---------------- one-time host-side folding of weights / tables ----------------
def _rotate_half_matrix(d):
    """Signed permutation R with (t @ R) == rotate_half(t) for a single head."""
    half = d // 2
    r = np.zeros((d, d), np.float32)
    for j in range(half):
        r[j + half, j] = -1.0          # y[j]      = -t[j+half]
        r[j, j + half] = 1.0           # y[j+half] = +t[j]
    return r


def _block_diag(mat, n):
    d = mat.shape[0]
    out = np.zeros((n * d, n * d), np.float32)
    for i in range(n):
        out[i * d:(i + 1) * d, i * d:(i + 1) * d] = mat
    return out


def build_fused_weights(params):
    """Done ONCE at init: pre-transpose, fold 1/sqrt(d), rope/nope scatters AND the
    rotate_half permutation into the weights, pad everything lane-dense, and pack
    all weights into a single (HIDDEN, 288) operand."""
    inv_sqrt_d = 1.0 / math.sqrt(HEAD_DIM)
    r = _rotate_half_matrix(HEAD_DIM)
    r_q = jnp.asarray(_block_diag(r, NUM_HEADS))      # (Q_DIM,  Q_DIM)
    r_k = jnp.asarray(_block_diag(r, NUM_KV_HEADS))   # (KV_DIM, KV_DIM)

    # --- fused input projection (consumes hidden_states) ---
    w_q_t = params["q_proj"].T * inv_sqrt_d                                   # (HIDDEN, Q_DIM)
    w_q_rot = w_q_t @ r_q                                                     # rotate_half folded in
    w_kr = jnp.zeros((HIDDEN, KV_DIM), DTYPE).at[:, ROPE_IDX].set(params["W_k_r"].T)
    w_kr_rot = w_kr @ r_k
    w_down_t = params["W_down_k"].T                                           # (HIDDEN, C_DIM)
    used = 2 * Q_DIM + 2 * KV_DIM + C_DIM                                     # 104
    w_in = jnp.concatenate(
        [w_q_t, w_q_rot, w_kr, w_kr_rot, w_down_t,
         jnp.zeros((HIDDEN, W_IN_COLS - used), DTYPE)], axis=1)               # (HIDDEN, 128)

    # --- fused up projection (consumes the low-rank latent c_kv) ---
    w_upk = jnp.zeros((C_DIM, KV_DIM), DTYPE).at[:, NOPE_IDX].set(params["W_up_k"].T)
    w_upv = params["W_up_v"].T                                                # (C_DIM, KV_DIM)
    w_up = jnp.concatenate([w_upk, w_upv], axis=1)                            # (C_DIM, 32)
    w_up_pad = jnp.concatenate(
        [w_up, jnp.zeros((HIDDEN - C_DIM, 2 * KV_DIM), DTYPE)], axis=0)       # (HIDDEN, 32)

    # --- output projection, padded to a 128-lane-dense store ---
    w_o = jnp.concatenate(
        [params["o_proj"].T, jnp.zeros((Q_DIM, OUT_PAD - HIDDEN), DTYPE)], axis=1)  # (Q_DIM, 128)

    return jnp.concatenate([w_o, w_in, w_up_pad], axis=1)                     # (HIDDEN, 288)


def build_tables(batch, seq):
    """Single packed (H*B*S, 2*H*D + KV*B*S) table:
       cols [0:Q_DIM)        cos, wide (B*S, H*D) layout (rows 0:B*S)
       cols [Q_DIM:2*Q_DIM)  sin, same layout
       cols [2*Q_DIM:)       additive GQA/causal/batch bias (0 or -1e30), folded layout."""
    bs = batch * seq
    cos, sin = rope_cos_sin(seq)                                       # (S, D)
    cos_wide = np.tile(np.tile(cos, (batch, 1)), (1, NUM_HEADS))       # (B*S, H*D)
    sin_wide = np.tile(np.tile(sin, (batch, 1)), (1, NUM_HEADS))

    rows = NUM_HEADS * bs
    cols = NUM_KV_HEADS * bs
    qr = np.arange(rows)
    kr = np.arange(cols)
    h_q = qr // bs
    b_q = (qr // seq) % batch
    s_q = qr % seq
    g_k = kr // bs
    b_k = (kr // seq) % batch
    s_k = kr % seq
    valid = ((b_q[:, None] == b_k[None, :])
             & (g_k[None, :] == h_q[:, None] // N_REP)
             & (s_k[None, :] <= s_q[:, None]))
    bias = np.where(valid, 0.0, -1e30).astype(np.float32)              # (H*bs, KV*bs)

    tab = np.zeros((rows, 2 * Q_DIM + cols), np.float32)               # (64, 96)
    tab[:bs, 0:Q_DIM] = cos_wide
    tab[:bs, Q_DIM:2 * Q_DIM] = sin_wide
    tab[:, 2 * Q_DIM:] = bias
    return jnp.asarray(tab)


# ---------------- the fused Pallas kernel ----------------
def _fused_forward_kernel(batch, seq, x_ref, w_ref, tab_ref, o_ref):
    bs = batch * seq
    H, KV, D = NUM_HEADS, NUM_KV_HEADS, HEAD_DIM

    x = x_ref[...]                                                     # (bs, HIDDEN)

    # ---- fused projection 1: [q/sqrt(d) | rotate_half(q)/sqrt(d) | k_rope | rot(k_rope) | c_kv | 0]
    proj = jnp.dot(x, w_ref[:, WIN_OFF:WIN_OFF + W_IN_COLS],
                   preferred_element_type=jnp.float32)                 # (bs, 128)
    q     = proj[:, 0:Q_DIM]
    q_rot = proj[:, Q_DIM:2 * Q_DIM]
    k_pre = proj[:, 2 * Q_DIM:2 * Q_DIM + KV_DIM]                      # nope slots exactly 0
    k_rot = proj[:, 2 * Q_DIM + KV_DIM:2 * Q_DIM + 2 * KV_DIM]
    c_kv  = proj[:, 2 * Q_DIM + 2 * KV_DIM:2 * Q_DIM + 2 * KV_DIM + C_DIM]

    # ---- fused projection 2: [k_c scattered into nope slots | v]
    up = jnp.dot(c_kv, w_ref[0:C_DIM, WUP_OFF:WUP_OFF + 2 * KV_DIM],
                 preferred_element_type=jnp.float32)                   # (bs, 32)
    k_c = up[:, 0:KV_DIM]                                              # rope slots exactly 0
    v   = up[:, KV_DIM:]

    # ---- RoPE + key assembly, entirely in the wide (bs, heads*D) lane layout.
    # rotate_half was folded into the weights, so this is pure VPU FMAs; the nope
    # slots of k_pre / k_rot are exactly 0 and the rope slots of k_c are exactly 0,
    # so the "+ k_c" reproduces the module's scatter/gather key assembly exactly.
    cos = tab_ref[0:bs, 0:Q_DIM]                                       # (bs, H*D)
    sin = tab_ref[0:bs, Q_DIM:2 * Q_DIM]
    q = q * cos + q_rot * sin                                          # (bs, H*D)
    k = k_pre * cos[:, 0:KV_DIM] + k_rot * sin[:, 0:KV_DIM] + k_c      # (bs, KV*D)

    # ---- fold heads into rows: row = head*bs + b*seq + s (static slices + concats)
    q2 = jnp.concatenate([q[:, h * D:(h + 1) * D] for h in range(H)], axis=0)    # (H*bs, D)
    k2 = jnp.concatenate([k[:, g * D:(g + 1) * D] for g in range(KV)], axis=0)   # (KV*bs, D)
    v2 = jnp.concatenate([v[:, g * D:(g + 1) * D] for g in range(KV)], axis=0)   # (KV*bs, D)

    # ---- attention: all (batch, head) pairs in ONE QK^T and ONE PV contraction.
    # GQA mapping, batch-block structure and causality come from the precomputed
    # additive bias (0 / -1e30); masked probabilities are exactly 0 after exp.
    scores = lax.dot_general(q2, k2, (((1,), (1,)), ((), ())),
                             preferred_element_type=jnp.float32)       # (H*bs, KV*bs)
    scores = scores + tab_ref[:, 2 * Q_DIM:2 * Q_DIM + KV * bs]
    m = jnp.max(scores, axis=-1, keepdims=True)
    p = jnp.exp(scores - m)
    p = p * pl.reciprocal(jnp.sum(p, axis=-1, keepdims=True), approx=True)
    attn = jnp.dot(p, v2, preferred_element_type=jnp.float32)          # (H*bs, D)

    # ---- unfold heads back into lanes, then o_proj padded to a 128-lane-dense store
    attn_bs = jnp.concatenate([attn[h * bs:(h + 1) * bs, :] for h in range(H)], axis=1)  # (bs, H*D)
    out = jnp.dot(attn_bs, w_ref[:, WO_OFF:WO_OFF + OUT_PAD],
                  preferred_element_type=jnp.float32)                  # (bs, 128)
    o_ref[...] = out.astype(o_ref.dtype)


def _full_spec(shape):
    return pl.BlockSpec(shape, lambda: (0,) * len(shape))


@jax.jit
def custom_llama_attention_forward(hidden_states, w_pack, tab):
    """Fused forward of CustomLlamaAttention (eval, no cache, causal)."""
    b, s, _ = hidden_states.shape
    x2d = hidden_states.reshape(b * s, HIDDEN)
    out_pad = pl.pallas_call(
        partial(_fused_forward_kernel, b, s),
        out_shape=jax.ShapeDtypeStruct((b * s, OUT_PAD), hidden_states.dtype),
        in_specs=[_full_spec(x2d.shape), _full_spec(w_pack.shape), _full_spec(tab.shape)],
        out_specs=_full_spec((b * s, OUT_PAD)),
        compiler_params=pltpu.CompilerParams(vmem_limit_bytes=32 * 1024 * 1024),
    )(x2d, w_pack, tab)
    return out_pad[:, :HIDDEN].reshape(b, s, HIDDEN)


# ---------------- plain-JAX reference (mirrors the PyTorch module step by step) ----------------
def _rotate_half(x):
    d = x.shape[-1]
    return jnp.concatenate([-x[..., d // 2:], x[..., :d // 2]], axis=-1)


def reference_forward(hidden_states, params):
    b, s, _ = hidden_states.shape
    hp = lax.Precision.HIGHEST
    x2d = hidden_states.reshape(b * s, HIDDEN)

    def lin(x, w):
        return jnp.dot(x, w.T, precision=hp)

    q = lin(x2d, params["q_proj"]).reshape(b, s, NUM_HEADS, HEAD_DIM)
    k_r = lin(x2d, params["W_k_r"]).reshape(b, s, N_ROPE)
    c_kv = lin(x2d, params["W_down_k"])
    k_c = lin(c_kv, params["W_up_k"]).reshape(b, s, N_NOPE)
    v = lin(c_kv, params["W_up_v"]).reshape(b, s, NUM_KV_HEADS, HEAD_DIM)

    cos_np, sin_np = rope_cos_sin(s)
    cos = jnp.asarray(cos_np)[None, None]
    sin = jnp.asarray(sin_np)[None, None]

    key_flat = jnp.zeros((b, s, KV_DIM), DTYPE).at[..., ROPE_IDX].set(k_r)
    k_pre = key_flat.reshape(b, s, NUM_KV_HEADS, HEAD_DIM).transpose(0, 2, 1, 3)
    q_pre = q.transpose(0, 2, 1, 3)
    q_rot = q_pre * cos + _rotate_half(q_pre) * sin
    k_rot = k_pre * cos + _rotate_half(k_pre) * sin

    k_rot_flat = k_rot.transpose(0, 2, 1, 3).reshape(b, s, KV_DIM)
    k_r_rot = k_rot_flat[..., ROPE_IDX]
    key_flat = jnp.zeros((b, s, KV_DIM), DTYPE)
    key_flat = key_flat.at[..., NOPE_IDX].set(k_c).at[..., ROPE_IDX].set(k_r_rot)
    k_final = key_flat.reshape(b, s, NUM_KV_HEADS, HEAD_DIM).transpose(0, 2, 1, 3)
    v_final = v.transpose(0, 2, 1, 3)

    k_rep = jnp.repeat(k_final, N_REP, axis=1)
    v_rep = jnp.repeat(v_final, N_REP, axis=1)

    scores = jnp.einsum("bhqd,bhkd->bhqk", q_rot, k_rep, precision=hp) / math.sqrt(HEAD_DIM)
    causal = np.tril(np.ones((s, s), dtype=bool))
    scores = jnp.where(causal[None, None], scores, -jnp.inf)
    p = jax.nn.softmax(scores, axis=-1)
    attn = jnp.einsum("bhqk,bhkd->bhqd", p, v_rep, precision=hp)
    attn = attn.transpose(0, 2, 1, 3).reshape(b * s, Q_DIM)
    return lin(attn, params["o_proj"]).reshape(b, s, HIDDEN)


if __name__ == "__main__":
    key = jax.random.PRNGKey(0)
    k_param, k_x = jax.random.split(key)
    params = init_params(k_param)
    hidden_states = jax.random.normal(k_x, (BATCH, SEQ, HIDDEN), DTYPE)

    # one-time init work (weight / scale / rotate folding + packed tables)
    w_pack = build_fused_weights(params)
    tab = build_tables(BATCH, SEQ)

    out = custom_llama_attention_forward(hidden_states, w_pack, tab)
    jax.block_until_ready(out)

    assert out.shape == (BATCH, SEQ, HIDDEN)
    assert bool(jnp.all(jnp.isfinite(out)))

    # correctness vs. plain-JAX reference of the module semantics
    ref = reference_forward(hidden_states, params)
    np.testing.assert_allclose(np.asarray(out), np.asarray(ref), rtol=5e-2, atol=1e-3)

    print("KERNEL_OK")
</pallas_src>

<mosaic_0001>
module attributes {stable_mosaic.version = 11 : i64} {
  func.func @_fused_forward_kernel(%arg0: memref<16x32xf32, #tpu.memory_space<vmem>>, %arg1: memref<32x288xf32, #tpu.memory_space<vmem>>, %arg2: memref<64x96xf32, #tpu.memory_space<vmem>>, %arg3: memref<16x128xf32, #tpu.memory_space<vmem>>) attributes {dimension_semantics = [], scalar_prefetch = 0 : i64, scratch_operands = 0 : i64, tpu.core_type = #tpu.core_type<tc>} {
    %c0 = arith.constant 0 : index
    %c0_0 = arith.constant 0 : index
    %0 = vector.load %arg0[%c0, %c0_0] : memref<16x32xf32, #tpu.memory_space<vmem>>, vector<16x32xf32>
    %c0_1 = arith.constant 0 : index
    %c128 = arith.constant 128 : index
    %1 = vector.load %arg1[%c0_1, %c128] : memref<32x288xf32, #tpu.memory_space<vmem>>, vector<32x128xf32>
    %cst = arith.constant dense<0.000000e+00> : vector<16x128xf32>
    %2 = tpu.matmul %0, %1, %cst {dimension_numbers = #tpu.dot_dimension_numbers<[1], [0], [0], [1], [0, 0, 1, 1], [], []>} : vector<16x32xf32>, vector<32x128xf32>, vector<16x128xf32> -> vector<16x128xf32>
    %3 = vector.extract_strided_slice %2 {offsets = [0, 0], sizes = [16, 32], strides = [1, 1]} : vector<16x128xf32> to vector<16x32xf32>
    %4 = vector.extract_strided_slice %2 {offsets = [0, 32], sizes = [16, 32], strides = [1, 1]} : vector<16x128xf32> to vector<16x32xf32>
    %5 = vector.extract_strided_slice %2 {offsets = [0, 64], sizes = [16, 16], strides = [1, 1]} : vector<16x128xf32> to vector<16x16xf32>
    %6 = vector.extract_strided_slice %2 {offsets = [0, 80], sizes = [16, 16], strides = [1, 1]} : vector<16x128xf32> to vector<16x16xf32>
    %7 = vector.extract_strided_slice %2 {offsets = [0, 96], sizes = [16, 8], strides = [1, 1]} : vector<16x128xf32> to vector<16x8xf32>
    %c0_2 = arith.constant 0 : index
    %c256 = arith.constant 256 : index
    %8 = vector.load %arg1[%c0_2, %c256] : memref<32x288xf32, #tpu.memory_space<vmem>>, vector<8x32xf32>
    %cst_3 = arith.constant dense<0.000000e+00> : vector<16x32xf32>
    %9 = tpu.matmul %7, %8, %cst_3 {dimension_numbers = #tpu.dot_dimension_numbers<[1], [0], [0], [1], [0, 0, 1, 1], [], []>} : vector<16x8xf32>, vector<8x32xf32>, vector<16x32xf32> -> vector<16x32xf32>
    %10 = vector.extract_strided_slice %9 {offsets = [0, 0], sizes = [16, 16], strides = [1, 1]} : vector<16x32xf32> to vector<16x16xf32>
    %11 = vector.extract_strided_slice %9 {offsets = [0, 16], sizes = [16, 16], strides = [1, 1]} : vector<16x32xf32> to vector<16x16xf32>
    %c0_4 = arith.constant 0 : index
    %c0_5 = arith.constant 0 : index
    %12 = vector.load %arg2[%c0_4, %c0_5] : memref<64x96xf32, #tpu.memory_space<vmem>>, vector<16x32xf32>
    %c0_6 = arith.constant 0 : index
    %c32 = arith.constant 32 : index
    %13 = vector.load %arg2[%c0_6, %c32] : memref<64x96xf32, #tpu.memory_space<vmem>>, vector<16x32xf32>
    %14 = arith.mulf %3, %12 : vector<16x32xf32>
    %15 = arith.mulf %4, %13 : vector<16x32xf32>
    %16 = arith.addf %14, %15 : vector<16x32xf32>
    %17 = vector.extract_strided_slice %12 {offsets = [0, 0], sizes = [16, 16], strides = [1, 1]} : vector<16x32xf32> to vector<16x16xf32>
    %18 = arith.mulf %5, %17 : vector<16x16xf32>
    %19 = vector.extract_strided_slice %13 {offsets = [0, 0], sizes = [16, 16], strides = [1, 1]} : vector<16x32xf32> to vector<16x16xf32>
    %20 = arith.mulf %6, %19 : vector<16x16xf32>
    %21 = arith.addf %18, %20 : vector<16x16xf32>
    %22 = arith.addf %21, %10 : vector<16x16xf32>
    %23 = vector.extract_strided_slice %16 {offsets = [0, 0], sizes = [16, 8], strides = [1, 1]} : vector<16x32xf32> to vector<16x8xf32>
    %24 = vector.extract_strided_slice %16 {offsets = [0, 8], sizes = [16, 8], strides = [1, 1]} : vector<16x32xf32> to vector<16x8xf32>
    %25 = vector.extract_strided_slice %16 {offsets = [0, 16], sizes = [16, 8], strides = [1, 1]} : vector<16x32xf32> to vector<16x8xf32>
    %26 = vector.extract_strided_slice %16 {offsets = [0, 24], sizes = [16, 8], strides = [1, 1]} : vector<16x32xf32> to vector<16x8xf32>
    %27 = tpu.concatenate %23, %24, %25, %26 in 0 : vector<16x8xf32>, vector<16x8xf32>, vector<16x8xf32>, vector<16x8xf32> -> vector<64x8xf32>
    %28 = vector.extract_strided_slice %22 {offsets = [0, 0], sizes = [16, 8], strides = [1, 1]} : vector<16x16xf32> to vector<16x8xf32>
    %29 = vector.extract_strided_slice %22 {offsets = [0, 8], sizes = [16, 8], strides = [1, 1]} : vector<16x16xf32> to vector<16x8xf32>
    %30 = tpu.concatenate %28, %29 in 0 : vector<16x8xf32>, vector<16x8xf32> -> vector<32x8xf32>
    %31 = vector.extract_strided_slice %11 {offsets = [0, 0], sizes = [16, 8], strides = [1, 1]} : vector<16x16xf32> to vector<16x8xf32>
    %32 = vector.extract_strided_slice %11 {offsets = [0, 8], sizes = [16, 8], strides = [1, 1]} : vector<16x16xf32> to vector<16x8xf32>
    %33 = tpu.concatenate %31, %32 in 0 : vector<16x8xf32>, vector<16x8xf32> -> vector<32x8xf32>
    %cst_7 = arith.constant dense<0.000000e+00> : vector<64x32xf32>
    %34 = tpu.matmul %27, %30, %cst_7 {dimension_numbers = #tpu.dot_dimension_numbers<[1], [1], [0], [0], [0, 0, 1, 0], [], []>} : vector<64x8xf32>, vector<32x8xf32>, vector<64x32xf32> -> vector<64x32xf32>
    %c0_8 = arith.constant 0 : index
    %c64 = arith.constant 64 : index
    %35 = vector.load %arg2[%c0_8, %c64] : memref<64x96xf32, #tpu.memory_space<vmem>>, vector<64x32xf32>
    %36 = arith.addf %34, %35 : vector<64x32xf32>
    %cst_9 = arith.constant dense<0xFF800000> : vector<64xf32>
    %37 = vector.multi_reduction <maximumf>, %36, %cst_9 [1] : vector<64x32xf32> to vector<64xf32>
    %38 = vector.shape_cast %37 : vector<64xf32> to vector<64x1xf32>
    %39 = vector.broadcast %38 : vector<64x1xf32> to vector<64x32xf32>
    %40 = arith.subf %36, %39 : vector<64x32xf32>
    %41 = math.exp %40 : vector<64x32xf32>
    %cst_10 = arith.constant dense<0.000000e+00> : vector<64xf32>
    %42 = vector.multi_reduction <add>, %41, %cst_10 [1] : vector<64x32xf32> to vector<64xf32>
    %43 = vector.shape_cast %42 : vector<64xf32> to vector<64x1xf32>
    %44 = tpu.reciprocal %43 {approx = true} : vector<64x1xf32> -> vector<64x1xf32>
    %45 = vector.broadcast %44 : vector<64x1xf32> to vector<64x32xf32>
    %46 = arith.mulf %41, %45 : vector<64x32xf32>
    %cst_11 = arith.constant dense<0.000000e+00> : vector<64x8xf32>
    %47 = tpu.matmul %46, %33, %cst_11 {dimension_numbers = #tpu.dot_dimension_numbers<[1], [0], [0], [1], [0, 0, 1, 1], [], []>} : vector<64x32xf32>, vector<32x8xf32>, vector<64x8xf32> -> vector<64x8xf32>
    %48 = vector.extract_strided_slice %47 {offsets = [0, 0], sizes = [16, 8], strides = [1, 1]} : vector<64x8xf32> to vector<16x8xf32>
    %49 = vector.extract_strided_slice %47 {offsets = [16, 0], sizes = [16, 8], strides = [1, 1]} : vector<64x8xf32> to vector<16x8xf32>
    %50 = vector.extract_strided_slice %47 {offsets = [32, 0], sizes = [16, 8], strides = [1, 1]} : vector<64x8xf32> to vector<16x8xf32>
    %51 = vector.extract_strided_slice %47 {offsets = [48, 0], sizes = [16, 8], strides = [1, 1]} : vector<64x8xf32> to vector<16x8xf32>
    %52 = tpu.concatenate %48, %49, %50, %51 in 1 : vector<16x8xf32>, vector<16x8xf32>, vector<16x8xf32>, vector<16x8xf32> -> vector<16x32xf32>
    %c0_12 = arith.constant 0 : index
    %c0_13 = arith.constant 0 : index
    %53 = vector.load %arg1[%c0_12, %c0_13] : memref<32x288xf32, #tpu.memory_space<vmem>>, vector<32x128xf32>
    %cst_14 = arith.constant dense<0.000000e+00> : vector<16x128xf32>
    %54 = tpu.matmul %52, %53, %cst_14 {dimension_numbers = #tpu.dot_dimension_numbers<[1], [0], [0], [1], [0, 0, 1, 1], [], []>} : vector<16x32xf32>, vector<32x128xf32>, vector<16x128xf32> -> vector<16x128xf32>
    %c0_15 = arith.constant 0 : index
    %c0_16 = arith.constant 0 : index
    %55 = vector.load %arg3[%c0_15, %c0_16] : memref<16x128xf32, #tpu.memory_space<vmem>>, vector<16x128xf32>
    tpu.vector_store %arg3[%c0_15, %c0_16], %54 {strides = array<i32>} : memref<16x128xf32, #tpu.memory_space<vmem>>, vector<16x128xf32>,
    return
  }
}

</mosaic_0001>

<bundles_post_ra>
// kernel: custom_llama_attention_forward.1
= control target key start
LH: loop header
LB: loop body
LE: loop exit
PB: predicated region body
PF: predicated region fallthrough
CT: control target
= control target key end

     0   :  { %8 = vsyncpa [#allocation3], 0  ;;  %s1326_s0 = inlined_call_operand.hbm [shape: f32[16,32], index: 0, kind: input, shape index: {}]   ;;  %s1327_s1 = inlined_call_operand.hbm [shape: f32[32,288], index: 1, kind: input, shape index: {}]   ;;  %s1328_s2 = inlined_call_operand.hbm [shape: f32[64,96], index: 2, kind: input, shape index: {}]   ;;  %s1329_s3 = inlined_call_operand.vmem [shape: f32[16,128], index: 3, kind: output, shape index: {}]  }
   0x1   :  { %9 = vsyncpa [#allocation5], 0  ;;  %s1142_s12 = smov [#allocation4]   ;;  %s1072_s16 = scalar_lea.hbm %s1327_s1, 1536 }
   0x2   :  { %s27_s13 = sshll.u32 %s1142_s12, 4  ;;  %p1073_p0 = scmp.ne.s32.totalorder %s1327_s1, %s1072_s16  ;;  %s28_s13 = int_to_ptr.vmem [resolvable:$true] %s27_s13 }
   0x3   :  { %p1076_p1 = scmp.lt.u32.totalorder %s1072_s16, %s1327_s1 }
   0x5   :  { %p1078_p2 = pnand %p1076_p1, %p1073_p0 }
   0x7   :  { %1081 = shalt.err (!%p1078_p2)
}
   0x8   :  { %s1082_s21 = scalar_lea.vmem %s28_s13, 1536  ;;  %p1087_p4 = scmp.lt.s32.totalorder %s28_s13, %s28_s13 }
   0x9   :  { %p1083_p3 = scmp.ne.s32.totalorder %s28_s13, %s1082_s21  ;;  %p1088_p5 = scmp.lt.s32.totalorder %s1082_s21, %s1082_s21 }
   0xb   :  { %p1089_p6 = por %p1088_p5, %p1087_p4 }
   0xd   :  { %p1090_p7 = pnand %p1089_p6, %p1083_p3 }
   0xf   :  { %1093 = shalt.err (!%p1090_p7)
}
  0x10   :  { %s1143_s22 = smov 384   ;;  %s1144_s23 = smov 24  }
  0x11   :  { %33 = dma.hbm_to_vmem [thread:$0]  %s1327_s1, 1536, %s28_s13, [#allocation5], %s1143_s22, %s1143_s22, %s1144_s23  }
  0x12   :  { %s1145_s26 = smov [#allocation2]   ;;  %s1094_s30 = scalar_lea.hbm %s1326_s0, 256 }
  0x13   :  { %s15_s27 = sshll.u32 %s1145_s26, 4  ;;  %p1095_p8 = scmp.ne.s32.totalorder %s1326_s0, %s1094_s30  ;;  %s16_s27 = int_to_ptr.vmem [resolvable:$true] %s15_s27 }
  0x14   :  { %p1098_p9 = scmp.lt.u32.totalorder %s1094_s30, %s1326_s0 }
  0x16   :  { %p1100_p10 = pnand %p1098_p9, %p1095_p8 }
  0x18   :  { %1103 = shalt.err (!%p1100_p10)
}
  0x19   :  { %s1104_s8 = scalar_lea.vmem %s16_s27, 256  ;;  %p1109_p12 = scmp.lt.s32.totalorder %s16_s27, %s16_s27 }
  0x1a   :  { %p1105_p11 = scmp.ne.s32.totalorder %s16_s27, %s1104_s8  ;;  %p1110_p13 = scmp.lt.s32.totalorder %s1104_s8, %s1104_s8 }
  0x1c   :  { %p1111_p0 = por %p1110_p13, %p1109_p12 }
  0x1e   :  { %p1112_p1 = pnand %p1111_p0, %p1105_p11 }
  0x20   :  { %1115 = shalt.err (!%p1112_p1)
}
  0x21   :  { %s1146_s1 = smov 128   ;;  %s1147_s9 = smov 8  }
  0x22   :  { %21 = dma.hbm_to_vmem [thread:$0]  %s1326_s0, 256, %s16_s27, [#allocation3], %s1146_s1, %s1146_s1, %s1147_s9  }
  0x23   :  { %s1148_s12 = smov [#allocation6]   ;;  %s1116_s16 = scalar_lea.hbm %s1328_s2, 1024 }
  0x24   :  { %s39_s13 = sshll.u32 %s1148_s12, 4  ;;  %p1117_p2 = scmp.ne.s32.totalorder %s1328_s2, %s1116_s16  ;;  %s40_s13 = int_to_ptr.vmem [resolvable:$true] %s39_s13 }
  0x25   :  { %p1120_p3 = scmp.lt.u32.totalorder %s1116_s16, %s1328_s2 }
  0x27   :  { %p1122_p4 = pnand %p1120_p3, %p1117_p2 }
  0x29   :  { %1125 = shalt.err (!%p1122_p4)
}
  0x2a   :  { %s1126_s21 = scalar_lea.vmem %s40_s13, 1024  ;;  %p1131_p6 = scmp.lt.s32.totalorder %s40_s13, %s40_s13 }
  0x2b   :  { %p1127_p5 = scmp.ne.s32.totalorder %s40_s13, %s1126_s21  ;;  %p1132_p7 = scmp.lt.s32.totalorder %s1126_s21, %s1126_s21 }
  0x2d   :  { %p1133_p8 = por %p1132_p7, %p1131_p6 }
  0x2f   :  { %p1134_p9 = pnand %p1133_p8, %p1127_p5 }
  0x31   :  { %1137 = shalt.err (!%p1134_p9)
}
  0x32   :  { %45 = dma.hbm_to_vmem [thread:$0]  %s1328_s2, 1024, %s40_s13, [#allocation5], %s1146_s1, %s1146_s1, %s1147_s9  }
  0x33   :  { %1138 = dma.done.wait [#allocation3], 256  }
  0x34   :  { %1139 = vsyncadd [#allocation3], 4294967040 }
  0x35   :  { %1140 = dma.done.wait [#allocation5], 2560  }
  0x36   :  { %1141 = vsyncadd [#allocation5], 4294964736  ;;  %vm61_vm0 = vcmask 261120   ;;  %v57_v0 = vld [vmem:[#allocation4 + $0x8] sm:$0xff]  ;;  %v58_v1 = vld [vmem:[#allocation4 + $0x20] sm:$0xff]  ;;  %s1149_s24 = smov 48  }
  0x37   :  { %v59_v2 = vld [vmem:[#allocation4 + $0x38] sm:$0xff]  ;;  %v959_v3 = vpack.c.bf16 %v58_v1, %v57_v0  ;;  %v60_v4 = vld [vmem:[#allocation4 + $0x50] sm:$0xff]  ;;  %v230_v7 = vld [vmem:[#allocation6] sm:$0xff]  ;;  %s1150_s2 = smov 64   ;;  %s1151_s25 = smov 32   ;;  %vm150_vm1 = vcmask 64512  }
  0x38   :  { %v55_v5 = vld [vmem:[#allocation2] sm:$0xff]  ;;  %v963_v6 = vpack.c.bf16 %v60_v4, %v59_v2  ;;  %254 = vrot.lane.b32.xlu1 %v230_v7, %s1149_s24  ;;  %v231_v8 = vld [vmem:[#allocation6 + $0x8] sm:$0xff]  ;;  %v56_v9 = vld [vmem:[#allocation2 + $0x8] sm:$0xff]  ;;  %s1152_s26 = smov 112   ;;  %s1153_s27 = smov 96   ;;  %vm731_vm3 = vcmask 195584  }
  0x39   :  { %900 = vmatprep.mubr.msk.f32.mxu0 %vm61_vm0, %v55_v5  ;;  %960 = vmatprep.subr.bf16.mxu0 %v959_v3  ;;  %v143_v10 = vld [vmem:[#allocation4 + $0x10] sm:$0xff]  ;;  %s1154_s28 = smov 120   ;;  %s1155_s29 = smov 104   ;;  %vm1241_vm2 = vmpackc.low %vm150_vm1, %vm150_vm1  ;;  %v307_v48 = vld [vmem:[#allocation6 + $0x18] sm:$0xff]  ;;  %vm728_vm4 = vcmask 130048  }
  0x3a   :  { %962 = vmatpush3.bf16.msra.mxu0 %v959_v3  ;;  %903 = vmatprep.subr.mxu1 %v143_v10  ;;  %v306_v47 = vld [vmem:[#allocation6 + $0x10] sm:$0xff]  ;;  %v308_v49 = vld [vmem:[#allocation6 + $0x20] sm:$0xff]  ;;  %v309_v50 = vld [vmem:[#allocation6 + $0x28] sm:$0xff]  ;;  %s1156_s30 = smov 16  }
  0x3b   :  { %964 = vmatprep.subr.bf16.mxu0 %v963_v6  ;;  %904 = vmatpush3.msra.mxu1 %v143_v10  ;;  %v310_v51 = vld [vmem:[#allocation6 + $0x30] sm:$0xff]  ;;  %v311_v52 = vld [vmem:[#allocation6 + $0x38] sm:$0xff] }
  0x3c   :  { %256 = vrot.lane.b32.xlu1 %v231_v8, %s1149_s24 }
  0x3e   :  { %966 = vmatpush3.bf16.msra.mxu0 %v963_v6 }
  0x40   :  { %248 = vrot.lane.b32.xlu1 %v231_v8, %s1150_s2 }
  0x41   :  { %901 = vmatmul.mubr.msk.f32.vlgmr.msra.gmra.mrb[0].mxu0 %vm61_vm0, %v56_v9 }
  0xaa   :  { %v255_v11 = vpop.permute.xlu1 %254 }
  0xae   :  { %v257_v12 = vpop.permute.xlu1 %256 }
  0xb2   :  { %v1230_v24 = vpop.permute.xlu1 %248 }
 0x114   :  { %v902_v13 = vpop.f32.mrb[0].mxu0 }
 0x115   :  { %v134_v14 = vpop.f32.mrb[1].mxu0  ;;  %v261_v15 = vmul.f32 %v902_v13, %v257_v12  ;;  %v253_v26 = vmul.f32 %v902_v13, %v1230_v24  ;;  %v233_v38 = vmul.f32 %v902_v13, %v231_v8 }
 0x116   :  { %146 = vrot.lane.b32.xlu0 %v134_v14, %s1151_s25  ;;  %v260_v16 = vmul.f32 %v255_v11, %v134_v14  ;;  %v232_v22 = vmul.f32 %v230_v7, %v134_v14 }
 0x117   :  { %266 = vrot.lane.b32.xlu1 %v261_v15, %s1152_s26 }
 0x11a   :  { %148 = vrot.lane.b32.xlu0 %v902_v13, %s1151_s25 }
 0x11e   :  { %246 = vrot.lane.b32.xlu0 %v230_v7, %s1150_s2 }
 0x122   :  { %264 = vrot.lane.b32.xlu0 %v260_v16, %s1152_s26 }
 0x188   :  { %v147_v17 = vpop.permute.xlu0 %146 }
 0x189   :  { %905 = vmatprep.mubr.msk.f32.mxu1 %vm150_vm1, %v147_v17  ;;  %v267_v25 = vpop.permute.xlu1 %266 }
 0x18a   :  { %v271_v29 = vadd.f32 %v267_v25, %v253_v26 }
 0x18c   :  { %v149_v18 = vpop.permute.xlu0 %148 }
 0x18d   :  { %906 = vmatmul.mubr.msk.f32.vlgmr.msra.gmra.mrb[0].mxu1 %vm150_vm1, %v149_v18 }
 0x190   :  { %v1228_v23 = vpop.permute.xlu0 %246 }
 0x191   :  { %v252_v28 = vmul.f32 %v1228_v23, %v134_v14 }
 0x194   :  { %v265_v27 = vpop.permute.xlu0 %264 }
 0x195   :  { %v270_v30 = vadd.f32 %v265_v27, %v252_v28 }
 0x260   :  { %v907_v19 = vpop.f32.mrb[0].mxu1 }
 0x261   :  { %276 = vrot.lane.b32.xlu1 %v907_v19, %s1150_s2  ;;  %v221_v20 = vpop.f32.mrb[1].mxu1 }
 0x262   :  { %v1225_v21 = vpack.i.bf16 %v907_v19, %v221_v20  ;;  %274 = vrot.lane.b32.xlu0 %v221_v20, %s1150_s2 }
 0x265   :  { %236 = vrot.lane.b32.xlu1 %v232_v22, %s1153_s27 }
 0x2d3   :  { %v277_v31 = vpop.permute.xlu1 %276 }
 0x2d4   :  { %v281_v32 = vadd.f32 %v277_v31, %v271_v29  ;;  %v275_v33 = vpop.permute.xlu0 %274 }
 0x2d5   :  { %v280_v34 = vadd.f32 %v275_v33, %v270_v30 }
 0x2d7   :  { %v1015_v35 = vpack.i.bf16 %v281_v32, %v280_v34  ;;  %v237_v36 = vpop.permute.xlu1 %236 }
 0x2d8   :  { %v242_v37 = vadd.f32 %v237_v36, %v232_v22 }
 0x2d9   :  { %1011 = vrot.lane.b32.xlu0 %v1015_v35, %s1154_s28  ;;  %1016 = vrot.lane.b32.xlu1 %v1015_v35, %s1150_s2 }
 0x2da   :  { %916 = vmatprep.mubr.msk.f32.mxu1 %vm150_vm1, %v242_v37 }
 0x2dd   :  { %238 = vrot.lane.b32.xlu0 %v233_v38, %s1153_s27  ;;  %284 = vrot.lane.b32.xlu1 %v242_v37, %s1154_s28 }
 0x2e1   :  { %288 = vrot.lane.b32.xlu1 %v242_v37, %s1152_s26 }
 0x2e5   :  { %292 = vrot.lane.b32.xlu1 %v242_v37, %s1155_s29 }
 0x2e9   :  { %326 = vrot.lane.b32.xlu1 %v306_v47, %s1150_s2 }
 0x2ed   :  { %330 = vrot.lane.b32.xlu1 %v308_v49, %s1150_s2 }
 0x2f1   :  { %334 = vrot.lane.b32.xlu1 %v310_v51, %s1150_s2 }
 0x34b   :  { %v1012_v39 = vpop.permute.xlu0 %1011  ;;  %v1017_v40 = vpop.permute.xlu1 %1016 }
 0x34c   :  { %v1019_v41 = vunpack.i.h.bf16 %v1017_v40  ;;  %v1018_v42 = vunpack.i.l.bf16 %v1017_v40  ;;  %1021 = vrot.lane.b32.xlu0 %v1012_v39, %s1150_s2 }
 0x34e   :  { %v967_v44 = vpack.c.bf16 %v1019_v41, %v1018_v42 }
 0x34f   :  { %v239_v45 = vpop.permute.xlu0 %238  ;;  %v285_v57 = vpop.permute.xlu1 %284 }
 0x350   :  { %969 = vmatprep.subr.msk.bf16.mxu1 %vm1241_vm2, %v967_v44  ;;  %v243_v46 = vadd.f32 %v239_v45, %v233_v38 }
 0x351   :  { %972 = vmatpush3.bf16.xpose.msk.msra.mxu1 %vm1241_vm2, %v967_v44 }
 0x352   :  { %286 = vrot.lane.b32.xlu0 %v243_v46, %s1154_s28 }
 0x353   :  { %v289_v59 = vpop.permute.xlu1 %288 }
 0x356   :  { %290 = vrot.lane.b32.xlu0 %v243_v46, %s1152_s26 }
 0x357   :  { %v293_v61 = vpop.permute.xlu1 %292 }
 0x35a   :  { %294 = vrot.lane.b32.xlu0 %v243_v46, %s1155_s29 }
 0x35b   :  { %v327_v0 = vpop.permute.xlu1 %326 }
 0x35e   :  { %328 = vrot.lane.b32.xlu0 %v307_v48, %s1150_s2 }
 0x35f   :  { %v331_v11 = vpop.permute.xlu1 %330 }
 0x362   :  { %332 = vrot.lane.b32.xlu0 %v309_v50, %s1150_s2 }
 0x363   :  { %v335_v20 = vpop.permute.xlu1 %334 }
 0x366   :  { %336 = vrot.lane.b32.xlu0 %v311_v52, %s1150_s2 }
 0x3be   :  { %v1022_v53 = vpop.permute.xlu0 %1021 }
 0x3bf   :  { %v1024_v54 = vunpack.i.h.bf16 %v1022_v53  ;;  %v1023_v55 = vunpack.i.l.bf16 %v1022_v53 }
 0x3c1   :  { %v973_v56 = vpack.c.bf16 %v1024_v54, %v1023_v55 }
 0x3c3   :  { %975 = vmatprep.subr.msk.bf16.mxu1 %vm1241_vm2, %v973_v56 }
 0x3c4   :  { %978 = vmatpush3.bf16.xpose.msk.msra.mxu1 %vm1241_vm2, %v973_v56  ;;  %v287_v58 = vpop.permute.xlu0 %286 }
 0x3c8   :  { %v291_v60 = vpop.permute.xlu0 %290 }
 0x3cb   :  { %917 = vmatmul.mubr.msk.f32.vlgmr.msra.gmra.mrb[2].mxu1 %vm150_vm1, %v243_v46 }
 0x3cc   :  { %919 = vmatprep.mubr.msk.f32.mxu1 %vm150_vm1, %v285_v57  ;;  %v295_v62 = vpop.permute.xlu0 %294 }
 0x3cf   :  { %920 = vmatmul.mubr.msk.f32.gmra.mrb[4].mxu1 %vm150_vm1, %v287_v58 }
 0x3d0   :  { %922 = vmatprep.mubr.msk.f32.mxu1 %vm150_vm1, %v289_v59  ;;  %v329_v63 = vpop.permute.xlu0 %328 }
 0x3d3   :  { %923 = vmatmul.mubr.msk.f32.gmra.mrb[6].mxu1 %vm150_vm1, %v291_v60 }
 0x3d4   :  { %925 = vmatprep.mubr.msk.f32.mxu1 %vm150_vm1, %v293_v61  ;;  %v333_v8 = vpop.permute.xlu0 %332 }
 0x3d7   :  { %926 = vmatmul.mubr.msk.f32.gmra.mrb[8].mxu1 %vm150_vm1, %v295_v62 }
 0x3d8   :  { %v337_v19 = vpop.permute.xlu0 %336 }
 0x49e   :  { %v918_v1 = vpop.f32.mrb[2].mxu1 }
 0x49f   :  { %v440_v2 = vadd.f32 %v918_v1, %v1230_v24  ;;  %v434_v3 = vpop.f32.mrb[3].mxu1 }
 0x4a0   :  { %v435_v4 = vadd.f32 %v434_v3, %v1228_v23 }
 0x4a1   :  { %v476_v5 = vsel %vm61_vm0, %v440_v2, -inf }
 0x4a2   :  { %477 = vmax.xlane.f32.xlu0 %v476_v5  ;;  %v921_v6 = vpop.f32.mrb[4].mxu1  ;;  %v473_v7 = vsel %vm61_vm0, %v435_v4, -inf }
 0x4a3   :  { %v450_v9 = vadd.f32 %v921_v6, %v329_v63  ;;  %v444_v10 = vpop.f32.mrb[5].mxu1  ;;  %474 = vmax.xlane.f32.xlu1 %v473_v7 }
 0x4a4   :  { %v445_v12 = vadd.f32 %v444_v10, %v327_v0 }
 0x4a5   :  { %v482_v13 = vsel %vm61_vm0, %v450_v9, -inf }
 0x4a6   :  { %v924_v14 = vpop.f32.mrb[6].mxu1  ;;  %v479_v15 = vsel %vm61_vm0, %v445_v12, -inf }
 0x4a7   :  { %v460_v16 = vadd.f32 %v924_v14, %v333_v8  ;;  %v454_v17 = vpop.f32.mrb[7].mxu1  ;;  %480 = vmax.xlane.f32.xlu0 %v479_v15  ;;  %483 = vmax.xlane.f32.xlu1 %v482_v13 }
 0x4a8   :  { %v455_v18 = vadd.f32 %v454_v17, %v331_v11 }
 0x4a9   :  { %v488_v22 = vsel %vm61_vm0, %v460_v16, -inf }
 0x4aa   :  { %v927_v23 = vpop.f32.mrb[8].mxu1  ;;  %v485_v24 = vsel %vm61_vm0, %v455_v18, -inf }
 0x4ab   :  { %v470_v25 = vadd.f32 %v927_v23, %v337_v19  ;;  %v464_v26 = vpop.f32.mrb[9].mxu1  ;;  %486 = vmax.xlane.f32.xlu0 %v485_v24  ;;  %489 = vmax.xlane.f32.xlu1 %v488_v22 }
 0x4ac   :  { %v465_v27 = vadd.f32 %v464_v26, %v335_v20 }
 0x4ad   :  { %v494_v28 = vsel %vm61_vm0, %v470_v25, -inf }
 0x4ae   :  { %v491_v29 = vsel %vm61_vm0, %v465_v27, -inf }
 0x4af   :  { %492 = vmax.xlane.f32.xlu0 %v491_v29  ;;  %495 = vmax.xlane.f32.xlu1 %v494_v28 }
 0x4c5   :  { %1026 = vrot.lane.b32.xlu0 %v1225_v21, %s1154_s28 }
 0x52f   :  { %v478_v30 = vpop.xlane.xlu0 %477 }
 0x530   :  { %v498_v31 = vsub.f32 %v440_v2, %v478_v30  ;;  %v475_v32 = vpop.xlane.xlu1 %474 }
 0x531   :  { %v497_v33 = vsub.f32 %v435_v4, %v475_v32 }
 0x532   :  { %v507_v34 = vmul.f32 1.442695, %v498_v31 }
 0x533   :  { %v505_v35 = vmul.f32 1.442695, %v497_v33 }
 0x534   :  { %1040 = vpow2.f32 %v507_v34  ;;  %v481_v36 = vpop.xlane.xlu0 %480  ;;  %v484_v37 = vpop.xlane.xlu1 %483 }
 0x535   :  { %v500_v38 = vsub.f32 %v450_v9, %v484_v37  ;;  %1042 = vpow2.f32 %v505_v35  ;;  %v499_v39 = vsub.f32 %v445_v12, %v481_v36 }
 0x537   :  { %v511_v40 = vmul.f32 1.442695, %v500_v38  ;;  %v509_v43 = vmul.f32 1.442695, %v499_v39  ;;  %v734_v39 = vld [vmem:[#allocation4] sm:$0xff] }
 0x538   :  { %v487_v41 = vpop.xlane.xlu0 %486  ;;  %v490_v42 = vpop.xlane.xlu1 %489 }
 0x539   :  { %1044 = vpow2.f32 %v511_v40  ;;  %v502_v44 = vsub.f32 %v460_v16, %v490_v42  ;;  %v501_v48 = vsub.f32 %v455_v18, %v487_v41  ;;  %v735_v40 = vld [vmem:[#allocation4 + $0x18] sm:$0xff] }
 0x53a   :  { %1046 = vpow2.f32 %v509_v43  ;;  %v987_v41 = vpack.c.bf16 %v735_v40, %v734_v39 }
 0x53b   :  { %v515_v49 = vmul.f32 1.442695, %v502_v44  ;;  %v513_v54 = vmul.f32 1.442695, %v501_v48  ;;  %v736_v44 = vld [vmem:[#allocation4 + $0x30] sm:$0xff] }
 0x53c   :  { %v493_v45 = vpop.xlane.xlu0 %492  ;;  %v496_v51 = vpop.xlane.xlu1 %495 }
 0x53d   :  { %v503_v46 = vsub.f32 %v465_v27, %v493_v45  ;;  %v504_v55 = vsub.f32 %v470_v25, %v496_v51  ;;  %v737_v45 = vld [vmem:[#allocation4 + $0x48] sm:$0xff] }
 0x53e   :  { %v1281_v47 = vpop.eup %1040 }
 0x53f   :  { %v517_v50 = vmul.f32 1.442695, %v503_v46  ;;  %v524_v52 = vsel %vm61_vm0, %v1281_v47, 0.0  ;;  %v1043_v53 = vpop.eup %1042  ;;  %v519_v58 = vmul.f32 1.442695, %v504_v55  ;;  %v991_v46 = vpack.c.bf16 %v737_v45, %v736_v44 }
 0x540   :  { %525 = vadd.xlane.f32.xlu1 %v524_v52  ;;  %v521_v56 = vsel %vm61_vm0, %v1043_v53, 0.0  ;;  %v1027_v6 = vpop.permute.xlu0 %1026 }
 0x541   :  { %1048 = vpow2.f32 %v517_v50 }
 0x542   :  { %1050 = vpow2.f32 %v515_v49 }
 0x543   :  { %v1286_v57 = vpop.eup %1044  ;;  %1052 = vpow2.f32 %v513_v54 }
 0x544   :  { %522 = vadd.xlane.f32.xlu1 %v521_v56  ;;  %v530_v59 = vsel %vm61_vm0, %v1286_v57, 0.0  ;;  %v1047_v60 = vpop.eup %1046  ;;  %1054 = vpow2.f32 %v519_v58 }
 0x545   :  { %v527_v62 = vsel %vm61_vm0, %v1047_v60, 0.0 }
 0x548   :  { %531 = vadd.xlane.f32.xlu1 %v530_v59 }
 0x54b   :  { %v1290_v61 = vpop.eup %1048 }
 0x54c   :  { %v1051_v63 = vpop.eup %1050  ;;  %528 = vadd.xlane.f32.xlu1 %v527_v62  ;;  %v539_v0 = vsel %vm61_vm0, %v1290_v61, 0.0 }
 0x54d   :  { %540 = vadd.xlane.f32.xlu0 %v539_v0  ;;  %v536_v1 = vsel %vm61_vm0, %v1051_v63, 0.0  ;;  %v1053_v2 = vpop.eup %1052 }
 0x54e   :  { %v533_v3 = vsel %vm61_vm0, %v1053_v2, 0.0  ;;  %v1055_v4 = vpop.eup %1054 }
 0x54f   :  { %v542_v5 = vsel %vm61_vm0, %v1055_v4, 0.0 }
 0x550   :  { %537 = vadd.xlane.f32.xlu1 %v536_v1 }
 0x554   :  { %534 = vadd.xlane.f32.xlu1 %v533_v3 }
 0x558   :  { %543 = vadd.xlane.f32.xlu1 %v542_v5 }
 0x569   :  { %1031 = vrot.lane.b32.xlu1 %v1225_v21, %s1152_s26 }
 0x56d   :  { %1036 = vrot.lane.b32.xlu1 %v1027_v6, %s1152_s26 }
 0x5cd   :  { %v526_v7 = vpop.xlane.xlu1 %525 }
 0x5d1   :  { %v523_v8 = vpop.xlane.xlu1 %522 }
 0x5d2   :  { %1056 = vrcp.f32 %v523_v8 }
 0x5d3   :  { %1058 = vrcp.f32 %v526_v7 }
 0x5d5   :  { %v532_v9 = vpop.xlane.xlu1 %531 }
 0x5d9   :  { %v529_v10 = vpop.xlane.xlu1 %528 }
 0x5da   :  { %1060 = vrcp.f32 %v529_v10  ;;  %v541_v19 = vpop.xlane.xlu0 %540 }
 0x5db   :  { %1062 = vrcp.f32 %v532_v9 }
 0x5dc   :  { %v1057_v11 = vpop.eup %1056 }
 0x5dd   :  { %v538_v12 = vpop.xlane.xlu1 %537  ;;  %v553_v13 = vmul.f32 %v1057_v11, %v1043_v53  ;;  %v1059_v25 = vpop.eup %1058 }
 0x5de   :  { %v554_v27 = vmul.f32 %v1059_v25, %v1281_v47 }
 0x5df   :  { %936 = vmatprep.mubr.msk.f32.mxu0 %vm61_vm0, %v553_v13 }
 0x5e1   :  { %v535_v14 = vpop.xlane.xlu1 %534 }
 0x5e2   :  { %1064 = vrcp.f32 %v535_v14 }
 0x5e3   :  { %1066 = vrcp.f32 %v538_v12 }
 0x5e4   :  { %1068 = vrcp.f32 %v541_v19  ;;  %v1061_v26 = vpop.eup %1060 }
 0x5e5   :  { %v544_v15 = vpop.xlane.xlu1 %543  ;;  %v1063_v28 = vpop.eup %1062  ;;  %v555_v29 = vmul.f32 %v1061_v26, %v1047_v60 }
 0x5e6   :  { %1070 = vrcp.f32 %v544_v15  ;;  %v556_v31 = vmul.f32 %v1063_v28, %v1286_v57 }
 0x5e9   :  { %v1032_v16 = vpop.permute.xlu1 %1031 }
 0x5ea   :  { %v1034_v17 = vunpack.i.h.bf16 %v1032_v16  ;;  %v1033_v18 = vunpack.i.l.bf16 %v1032_v16 }
 0x5ec   :  { %v979_v21 = vpack.c.bf16 %v1034_v17, %v1033_v18  ;;  %v1065_v30 = vpop.eup %1064 }
 0x5ed   :  { %v1037_v20 = vpop.permute.xlu1 %1036  ;;  %v1067_v32 = vpop.eup %1066  ;;  %v557_v33 = vmul.f32 %v1065_v30, %v1053_v2 }
 0x5ee   :  { %v1039_v22 = vunpack.i.h.bf16 %v1037_v20  ;;  %v1038_v23 = vunpack.i.l.bf16 %v1037_v20  ;;  %980 = vmatprep.subr.bf16.mxu0 %v979_v21  ;;  %v1069_v34 = vpop.eup %1068  ;;  %v558_v35 = vmul.f32 %v1067_v32, %v1051_v63 }
 0x5ef   :  { %982 = vmatpush3.bf16.msra.mxu0 %v979_v21  ;;  %v559_v37 = vmul.f32 %v1069_v34, %v1290_v61 }
 0x5f0   :  { %v983_v24 = vpack.c.bf16 %v1039_v22, %v1038_v23  ;;  %v1071_v36 = vpop.eup %1070 }
 0x5f1   :  { %v560_v38 = vmul.f32 %v1071_v36, %v1055_v4 }
 0x5f2   :  { %984 = vmatprep.subr.bf16.mxu0 %v983_v24 }
 0x5f3   :  { %986 = vmatpush3.bf16.msra.mxu0 %v983_v24 }
 0x5f4   :  { %988 = vmatprep.subr.bf16.mxu0 %v987_v41 }
 0x5f6   :  { %937 = vmatmul.mubr.msk.f32.vlgmr.msra.gmra.mrb[2].mxu0 %vm61_vm0, %v554_v27 }
 0x5f7   :  { %939 = vmatprep.mubr.msk.f32.mxu0 %vm61_vm0, %v555_v29  ;;  %990 = vmatpush3.bf16.msra.mxu0 %v987_v41 }
 0x5f8   :  { %992 = vmatprep.subr.bf16.mxu0 %v991_v46 }
 0x5fa   :  { %940 = vmatmul.mubr.msk.f32.gmra.mrb[4].mxu0 %vm61_vm0, %v556_v31 }
 0x5fb   :  { %942 = vmatprep.mubr.msk.f32.mxu0 %vm61_vm0, %v557_v33  ;;  %994 = vmatpush3.bf16.msra.mxu0 %v991_v46 }
 0x5fe   :  { %943 = vmatmul.mubr.msk.f32.gmra.mrb[6].mxu0 %vm61_vm0, %v558_v35 }
 0x5ff   :  { %945 = vmatprep.mubr.msk.f32.mxu0 %vm61_vm0, %v559_v37 }
 0x602   :  { %946 = vmatmul.mubr.msk.f32.gmra.mrb[8].mxu0 %vm61_vm0, %v560_v38 }
 0x6c9   :  { %v938_v42 = vpop.f32.mrb[2].mxu0 }
 0x6ca   :  { %v663_v43 = vpop.f32.mrb[3].mxu0 }
 0x6cd   :  { %v941_v47 = vpop.f32.mrb[4].mxu0 }
 0x6ce   :  { %706 = vrot.lane.b32.xlu0 %v941_v47, %s1147_s9  ;;  %v673_v48 = vpop.f32.mrb[5].mxu0 }
 0x6cf   :  { %704 = vrot.lane.b32.xlu1 %v673_v48, %s1147_s9 }
 0x6d1   :  { %v944_v49 = vpop.f32.mrb[6].mxu0 }
 0x6d2   :  { %v683_v50 = vpop.f32.mrb[7].mxu0 }
 0x6d3   :  { %714 = vrot.lane.b32.xlu1 %v944_v49, %s1156_s30 }
 0x6d5   :  { %v947_v51 = vpop.f32.mrb[8].mxu0 }
 0x6d6   :  { %v693_v52 = vpop.f32.mrb[9].mxu0 }
 0x6d7   :  { %712 = vrot.lane.b32.xlu1 %v683_v50, %s1156_s30 }
 0x6db   :  { %720 = vrot.lane.b32.xlu1 %v693_v52, %s1144_s23 }
 0x6df   :  { %722 = vrot.lane.b32.xlu1 %v947_v51, %s1144_s23 }
 0x740   :  { %v707_v57 = vpop.permute.xlu0 %706 }
 0x741   :  { %v705_v53 = vpop.permute.xlu1 %704  ;;  %v727_v61 = vsel %vm150_vm1, %v938_v42, %v707_v57 }
 0x742   :  { %v726_v56 = vsel %vm150_vm1, %v663_v43, %v705_v53 }
 0x745   :  { %v715_v54 = vpop.permute.xlu1 %714 }
 0x746   :  { %v730_v62 = vsel %vm728_vm4, %v727_v61, %v715_v54 }
 0x749   :  { %v713_v55 = vpop.permute.xlu1 %712 }
 0x74a   :  { %v729_v58 = vsel %vm728_vm4, %v726_v56, %v713_v55 }
 0x74d   :  { %v721_v59 = vpop.permute.xlu1 %720 }
 0x74e   :  { %v732_v60 = vsel %vm731_vm3, %v729_v58, %v721_v59 }
 0x74f   :  { %956 = vmatprep.mubr.msk.f32.mxu0 %vm61_vm0, %v732_v60 }
 0x751   :  { %v723_v63 = vpop.permute.xlu1 %722 }
 0x752   :  { %v733_v0 = vsel %vm731_vm3, %v730_v62, %v723_v63 }
 0x753   :  { %957 = vmatmul.mubr.msk.f32.vlgmr.msra.gmra.mrb[10].mxu0 %vm61_vm0, %v733_v0 }
 0x826   :  { %v958_v1 = vpop.f32.mrb[10].mxu0 }
 0x827   :  { %820 = vst [vmem:[%s1329_s3 + $0x8] sm:$0xff] %v958_v1  ;;  %v810_v2 = vpop.f32.mrb[11].mxu0 }
 0x828   :  { %819 = vst [vmem:[%s1329_s3] sm:$0xff] %v810_v2 }
 0x829   :  { %825 = vsyncpa [#allocation3], 1 }
 0x82a   :  { %826 = vsyncpa [#allocation5], 1 }

</bundles_post_ra>
